<compile_context>
chip_gen: v7x
topology: tpu7x:2x2x1
jax: 0.10.0
libtpu: 0.0.40
codegen_flags: <defaults>
</compile_context>

<pallas_src>
from functools import partial

import jax
import jax.numpy as jnp
from jax.experimental import pallas as pl
from jax.experimental.pallas import tpu as pltpu

_SUB = 8                      # sublanes per f32 vreg
_LANE = 128                   # lanes per vreg
_MIN_TB = _SUB * _LANE        # 1024: minimum batch tile (one full (8,128) slab)
_DEFAULT_TB = 256 * 1024      # default batch tile (~3 MiB HBM traffic per grid step)


def _round_up(x, m):
    return ((x + m - 1) // m) * m


def _choose_batch_tile(batch, requested):
    """Batch tile: multiple of 1024, <= padded batch, and <= ~batch/2 when possible
    so the 'parallel' grid axis has >= 2 tiles for v7x's two TensorCores."""
    tb = max(_MIN_TB, (int(requested) // _MIN_TB) * _MIN_TB)
    b_ceil = _round_up(batch, _MIN_TB)
    tb = min(tb, b_ceil)
    if b_ceil >= 2 * _MIN_TB:
        tb = min(tb, _round_up((batch + 1) // 2, _MIN_TB))
    return tb


def _linear_kernel(w_ref, b_ref, x_ref, o_ref):
    # w_ref: (IN,)           SMEM  float32 scalars
    # b_ref: (1,)            SMEM
    # x_ref: (IN*8, tb//8)   VMEM  rows [8f : 8f+8) hold feature f (batch on sublanes+lanes)
    # o_ref: (8,    tb//8)   VMEM  lane- and sublane-dense output slab
    in_features = x_ref.shape[0] // _SUB
    # VPU fused multiply-add; IN is tiny and static, so the Python loop unrolls cleanly.
    acc = x_ref[0:_SUB, :].astype(jnp.float32) * w_ref[0]
    for f in range(1, in_features):
        acc = acc + x_ref[_SUB * f:_SUB * (f + 1), :].astype(jnp.float32) * w_ref[f]
    o_ref[...] = (acc + b_ref[0]).astype(o_ref.dtype)


@partial(jax.jit, static_argnums=(3,))
def _forward(x, weight, bias, batch_tile):
    B, IN = x.shape
    OUT, IN_w = weight.shape
    assert IN == IN_w, "weight/in_features mismatch"
    assert OUT == 1, "kernel specialized for output_size=1 (the module spec)"

    tb = _choose_batch_tile(B, batch_tile)
    Bp = _round_up(B, tb)
    cols = Bp // _SUB
    tcols = tb // _SUB

    # Layout plumbing (fused under jit into one copy): x (B, IN) -> x^T (IN, Bp) padded
    # -> row-major reshape to (IN*8, Bp/8). Batch element j lands at
    # (row = 8f + j // (Bp/8), col = j % (Bp/8)) for feature f; the output uses the same
    # (j // (Bp/8), j % (Bp/8)) mapping, so the in-kernel FMA is purely elementwise.
    xT = jnp.transpose(x)
    if Bp != B:
        xT = jnp.pad(xT, ((0, 0), (0, Bp - B)))
    x8 = xT.reshape(IN * _SUB, cols)

    w_flat = weight.reshape(IN).astype(jnp.float32)   # (IN,) -> SMEM
    b_flat = bias.reshape(OUT).astype(jnp.float32)    # (1,)  -> SMEM

    # Double-buffered in+out VMEM per step ~= 24*tb bytes (6 MiB at the default tile).
    need = 2 * (IN + 1) * _SUB * tcols * 4
    vmem_bytes = int(min(48 * 1024 * 1024, max(32 * 1024 * 1024, 2 * need)))

    y8 = pl.pallas_call(
        _linear_kernel,
        out_shape=jax.ShapeDtypeStruct((_SUB, cols), x.dtype),
        grid_spec=pl.GridSpec(
            grid=(Bp // tb,),
            in_specs=[
                pl.BlockSpec(memory_space=pltpu.MemorySpace.SMEM),    # weight scalars
                pl.BlockSpec(memory_space=pltpu.MemorySpace.SMEM),    # bias scalar
                pl.BlockSpec((IN * _SUB, tcols), lambda i: (0, i)),   # x batch tile
            ],
            out_specs=pl.BlockSpec((_SUB, tcols), lambda i: (0, i)),  # dense out tile
        ),
        compiler_params=pltpu.CompilerParams(
            dimension_semantics=("parallel",),   # shard batch tiles across TCs (v7x)
            vmem_limit_bytes=vmem_bytes,
        ),
    )(w_flat, b_flat, x8)

    # (8, Bp/8) -> (Bp,) recovers batch order (free reshape); strip pad; PyTorch layout.
    return y8.reshape(Bp)[:B].reshape(B, OUT)


def linear_regression_forward(x, weight, bias, *, batch_tile=_DEFAULT_TB):
    """y = x @ weight.T + bias computed in a Pallas TPU kernel.

    x:      (B, IN)   float32
    weight: (OUT, IN) float32  (PyTorch nn.Linear convention, OUT == 1 here)
    bias:   (OUT,)    float32
    returns (B, OUT)  float32
    """
    return _forward(x, weight, bias, int(batch_tile))


if __name__ == "__main__":
    input_size, output_size = 2, 1

    # Deterministic parameter init mimicking nn.Linear (uniform in +-1/sqrt(fan_in)).
    key = jax.random.PRNGKey(0)
    kw, kb, kx = jax.random.split(key, 3)
    bound = 1.0 / jnp.sqrt(jnp.float32(input_size))
    weight = jax.random.uniform(kw, (output_size, input_size),
                                minval=-bound, maxval=bound, dtype=jnp.float32)
    bias = jax.random.uniform(kb, (output_size,),
                              minval=-bound, maxval=bound, dtype=jnp.float32)

    # 1) The reference script's input: X = [[1,1],[1,2],[1,3]]
    X = jnp.array([[1.0, 1.0], [1.0, 2.0], [1.0, 3.0]], dtype=jnp.float32)
    yhat = jax.block_until_ready(linear_regression_forward(X, weight, bias))
    ref = X @ weight.T + bias
    assert yhat.shape == (3, 1)
    assert jnp.allclose(yhat, ref, atol=1e-5), (yhat, ref)

    # 2) Larger batch: tile auto-caps at batch/2 -> 2 grid tiles of 2048 (multi-tile path).
    Xb = jax.random.normal(kx, (4096, input_size), dtype=jnp.float32)
    yb = jax.block_until_ready(linear_regression_forward(Xb, weight, bias))
    refb = Xb @ weight.T + bias
    assert yb.shape == (4096, 1)
    assert jnp.allclose(yb, refb, atol=1e-5)

    print("KERNEL_OK")
</pallas_src>

<mosaic_0001>
module attributes {stable_mosaic.version = 11 : i64} {
  func.func @_linear_kernel(%arg0: i32, %arg1: memref<2xf32, #tpu.memory_space<smem>>, %arg2: memref<1xf32, #tpu.memory_space<smem>>, %arg3: memref<16x128xf32, #tpu.memory_space<vmem>>, %arg4: memref<8x128xf32, #tpu.memory_space<vmem>>) attributes {dimension_semantics = [#tpu.dimension_semantics<parallel>], iteration_bounds = array<i64: 1>, scalar_prefetch = 0 : i64, scratch_operands = 0 : i64, tpu.core_type = #tpu.core_type<tc>, window_params = [{transform_indices = @transform_0, window_bounds = array<i64: 2>}, {transform_indices = @transform_1, window_bounds = array<i64: 1>}, {transform_indices = @transform_2, window_bounds = array<i64: 16, 128>}, {transform_indices = @transform_3, window_bounds = array<i64: 8, 128>}]} {
    %c0 = arith.constant 0 : index
    %c0_0 = arith.constant 0 : index
    %0 = vector.load %arg3[%c0, %c0_0] : memref<16x128xf32, #tpu.memory_space<vmem>>, vector<8x128xf32>
    %c0_1 = arith.constant 0 : index
    %1 = memref.load %arg1[%c0_1] : memref<2xf32, #tpu.memory_space<smem>>
    %2 = vector.broadcast %1 : f32 to vector<8x128xf32>
    %3 = arith.mulf %0, %2 : vector<8x128xf32>
    %c8 = arith.constant 8 : index
    %c0_2 = arith.constant 0 : index
    %4 = vector.load %arg3[%c8, %c0_2] : memref<16x128xf32, #tpu.memory_space<vmem>>, vector<8x128xf32>
    %c1 = arith.constant 1 : index
    %5 = memref.load %arg1[%c1] : memref<2xf32, #tpu.memory_space<smem>>
    %6 = vector.broadcast %5 : f32 to vector<8x128xf32>
    %7 = arith.mulf %4, %6 : vector<8x128xf32>
    %8 = arith.addf %3, %7 : vector<8x128xf32>
    %c0_3 = arith.constant 0 : index
    %9 = memref.load %arg2[%c0_3] : memref<1xf32, #tpu.memory_space<smem>>
    %10 = vector.broadcast %9 : f32 to vector<8x128xf32>
    %11 = arith.addf %8, %10 : vector<8x128xf32>
    %c0_4 = arith.constant 0 : index
    %c0_5 = arith.constant 0 : index
    %12 = vector.load %arg4[%c0_4, %c0_5] : memref<8x128xf32, #tpu.memory_space<vmem>>, vector<8x128xf32>
    tpu.vector_store %arg4[%c0_4, %c0_5], %11 {strides = array<i32>} : memref<8x128xf32, #tpu.memory_space<vmem>>, vector<8x128xf32>,
    return
  }
  func.func @transform_0(%arg0: i32) -> i32 {
    %c0_i32 = arith.constant 0 : i32
    %c0_i32_0 = arith.constant 0 : i32
    return %c0_i32 : i32
  }
  func.func @transform_1(%arg0: i32) -> i32 {
    %c0_i32 = arith.constant 0 : i32
    %c0_i32_0 = arith.constant 0 : i32
    return %c0_i32 : i32
  }
  func.func @transform_2(%arg0: i32) -> (i32, i32) {
    %c0_i32 = arith.constant 0 : i32
    %c0_i32_0 = arith.constant 0 : i32
    return %c0_i32, %arg0 : i32, i32
  }
  func.func @transform_3(%arg0: i32) -> (i32, i32) {
    %c0_i32 = arith.constant 0 : i32
    %c0_i32_0 = arith.constant 0 : i32
    return %c0_i32, %arg0 : i32, i32
  }
}

</mosaic_0001>

<bundles_post_ra>
// kernel: _forward.1
= control target key start
LH: loop header
LB: loop body
LE: loop exit
PB: predicated region body
PF: predicated region fallthrough
CT: control target
= control target key end

     0   :  { %9 = vsyncpa [#allocation4], 0  ;;  %s98_s0 = inlined_call_operand.vmem [shape: f32[2], index: 0, kind: input, shape index: {}]   ;;  %s99_s1 = inlined_call_operand.<no memory space> [shape: f32[1], index: 1, kind: input, shape index: {}]   ;;  %s100_s2 = inlined_call_operand.vmem [shape: f32[16,128], index: 2, kind: input, shape index: {}]   ;;  %s101_s3 = inlined_call_operand.vmem [shape: f32[8,128], index: 3, kind: output, shape index: {}]  }
   0x1   :  { %s16_s14 = sshll.u32 %s98_s0, 4  ;;  %s17_s14 = int_to_ptr.vmem [resolvable:$true] %s16_s14 }
   0x2   :  { %s48_s15 = scalar_lea.vmem %s17_s14, 16  ;;  %p53_p1 = scmp.lt.s32.totalorder %s17_s14, %s17_s14 }
   0x3   :  { %p49_p0 = scmp.ne.s32.totalorder %s17_s14, %s48_s15  ;;  %p54_p2 = scmp.lt.s32.totalorder %s48_s15, %s48_s15 }
   0x5   :  { %p55_p3 = por %p54_p2, %p53_p1 }
   0x7   :  { %p56_p4 = pnand %p55_p3, %p49_p0 }
   0x9   :  { %59 = shalt.err (!%p56_p4)
}
   0xa   :  { %s62_s16 = smov [#allocation3]  }
   0xb   :  { %19 = dma.vmem_to_smem %s17_s14, 16, %s62_s16, [#allocation4]  }
   0xc   :  { %60 = dma.done.wait [#allocation4], 16  }
   0xd   :  { %61 = vsyncadd [#allocation4], 4294967280 }
   0xe   :  { %27 = sfence }
   0xf   :  { %s29_s17 = sld [smem:[#allocation3]]  ;;  %s46_s18 = sld [smem:[#allocation3 + $0x1]]  ;;  %v28_v0 = vld [vmem:[%s100_s2] sm:$0xff]  ;;  %v32_v1 = vld [vmem:[%s100_s2 + $0x8] sm:$0xff]  ;;  %v38_v6 = vstv %s99_s1 }
  0x15   :  { %v30_v2 = vstv %s29_s17  ;;  %v34_v3 = vstv %s46_s18 }
  0x16   :  { %v31_v4 = vmul.f32 %v30_v2, %v28_v0  ;;  %v35_v5 = vmul.f32 %v34_v3, %v32_v1 }
  0x18   :  { %v36_v7 = vadd.f32 %v35_v5, %v31_v4 }
  0x1a   :  { %v39_v8 = vadd.f32 %v38_v6, %v36_v7 }
  0x1c   :  { %40 = vst [vmem:[%s101_s3] sm:$0xff] %v39_v8 }
  0x1d   :  { %45 = vsyncpa [#allocation4], 1 }

</bundles_post_ra>
